<compile_context>
chip_gen: v5e
topology: v5e:2x2
jax: 0.10.0
libtpu: 0.0.40
codegen_flags: <defaults>
</compile_context>

<pallas_src>
import functools

import jax
import jax.numpy as jnp
from jax.experimental import pallas as pl
from jax.experimental.pallas import tpu as pltpu


def _gat_kernel(x_src_ref, x_dst_ref, wcat_ref, vsrc_ref, vdst_ref, mask_ref,
                bias_ref, o_ref, *, heads, out_dim):
    # x_src_ref: (N, F_in)        all source-node features (shared across tiles)
    # x_dst_ref: (TILE_M, F_in)   this tile's destination-node features
    # wcat_ref : (F_in, H*D)      head-concatenated projection matrix
    # vsrc_ref : (F_in, H)        folded W @ att_src  (per-head columns)
    # vdst_ref : (F_in, H)        folded W @ att_dst
    # mask_ref : (TILE_M, N)      bf16 additive mask: 0 where edge j->i, -1e30 else
    # bias_ref : (1, H*D)         output bias (after head concat)
    # o_ref    : (TILE_M, H*D)    lane-dense output tile
    x_src = x_src_ref[...]                                   # (N, F_in) f32
    x_dst = x_dst_ref[...]                                   # (TILE_M, F_in) f32

    # Fused multi-head projection for all source nodes, heads packed along lanes.
    xp = jnp.dot(x_src.astype(jnp.bfloat16),
                 wcat_ref[...].astype(jnp.bfloat16),
                 preferred_element_type=jnp.float32)          # (N, H*D)
    xp_bf = xp.astype(jnp.bfloat16)

    # Per-node attention scalars for all heads at once (skinny f32 matmuls).
    a_src = jnp.dot(x_src, vsrc_ref[...],
                    preferred_element_type=jnp.float32)       # (N, H)
    a_dst = jnp.dot(x_dst, vdst_ref[...],
                    preferred_element_type=jnp.float32)       # (TILE_M, H)
    a_src_t = a_src.T                                         # (H, N) — one XLU transpose

    mask = mask_ref[...].astype(jnp.float32)                  # (TILE_M, N), hoisted

    outs = []
    for h in range(heads):                                    # static unroll, H small
        # e[i, j] = LeakyReLU(a_dst_h[i] + a_src_h[j]) + mask[i, j]
        e = a_dst[:, h:h + 1] + a_src_t[h:h + 1, :]           # (TILE_M, N)
        e = jnp.where(e > 0, e, 0.2 * e)                      # negative_slope=0.2
        e = e + mask
        m = jnp.max(e, axis=-1, keepdims=True)
        p = jnp.exp(e - m)
        alpha = p * pl.reciprocal(jnp.sum(p, axis=-1, keepdims=True), approx=True)
        out_h = jnp.dot(alpha.astype(jnp.bfloat16),
                        xp_bf[:, h * out_dim:(h + 1) * out_dim],
                        preferred_element_type=jnp.float32)   # (TILE_M, D)
        outs.append(out_h)

    out = jnp.concatenate(outs, axis=-1) + bias_ref[...]      # (TILE_M, H*D)
    # ELU (GATWrapper default activation, alpha=1).
    out = jnp.where(out > 0, out, jnp.exp(out) - 1.0)
    o_ref[...] = out.astype(o_ref.dtype)


@jax.jit
def gat_forward(x, add_mask, W, att_src, att_dst, bias):
    """GATWrapper forward: GATConv (multi-head, concat=True) + ELU, dropout=0.

    x        : (N, F_in) f32 node features
    add_mask : (N, N) bf16 additive mask (0 iff edge j->i incl. self-loop, else -1e30)
    W        : (H, F_in, D) per-head projection weights (GATConv lin, no lin bias)
    att_src  : (H, 1, D), att_dst: (H, 1, D) attention vectors
    bias     : (H*D,) output bias
    Returns  : (N, H*D) f32
    """
    N, F_in = x.shape
    H, _, D = W.shape
    HD = H * D

    # Host/XLA-side parameter folds (traced once under jit).
    w_cat = jnp.transpose(W, (1, 0, 2)).reshape(F_in, HD)             # (F_in, H*D)
    v_src = jnp.einsum("hfd,hd->fh", W, att_src[:, 0, :])             # (F_in, H)
    v_dst = jnp.einsum("hfd,hd->fh", W, att_dst[:, 0, :])             # (F_in, H)
    bias2d = bias.reshape(1, HD)

    # Destination-row tiling: working set is O(TILE_M * N).
    MAX_TILE_M = 256
    tile_m = N if N <= MAX_TILE_M else MAX_TILE_M                     # multiple of 8 when tiled
    grid_m = pl.cdiv(N, tile_m)

    kernel = functools.partial(_gat_kernel, heads=H, out_dim=D)

    return pl.pallas_call(
        kernel,
        out_shape=jax.ShapeDtypeStruct((N, HD), jnp.float32),
        grid=(grid_m,),
        in_specs=[
            pl.BlockSpec((N, F_in), lambda i: (0, 0)),        # x (all sources, shared)
            pl.BlockSpec((tile_m, F_in), lambda i: (i, 0)),   # x (this tile's dst rows)
            pl.BlockSpec((F_in, HD), lambda i: (0, 0)),       # W_cat
            pl.BlockSpec((F_in, H), lambda i: (0, 0)),        # v_src
            pl.BlockSpec((F_in, H), lambda i: (0, 0)),        # v_dst
            pl.BlockSpec((tile_m, N), lambda i: (i, 0)),      # additive mask tile (bf16)
            pl.BlockSpec((1, HD), lambda i: (0, 0)),          # bias
        ],
        out_specs=pl.BlockSpec((tile_m, HD), lambda i: (i, 0)),
        compiler_params=pltpu.CompilerParams(
            dimension_semantics=("parallel",)),
    )(x, x, w_cat, v_src, v_dst, add_mask, bias2d)


def gat_reference(x, adj01, W, att_src, att_dst, bias):
    """Pure-JAX f32 reference (same math as PyG GATConv concat=True + ELU)."""
    H, F_in, D = W.shape
    N = x.shape[0]
    xp = jnp.einsum("nf,hfd->hnd", x, W)                      # (H, N, D)
    a_s = jnp.sum(xp * att_src, axis=-1)                      # (H, N)
    a_d = jnp.sum(xp * att_dst, axis=-1)                      # (H, N)
    e = a_d[:, :, None] + a_s[:, None, :]                     # (H, N_dst, N_src)
    e = jnp.where(e > 0, e, 0.2 * e)
    e = jnp.where(adj01[None] > 0, e, -1e30)
    alpha = jax.nn.softmax(e, axis=-1)
    out = jnp.einsum("hij,hjd->hid", alpha, xp)               # (H, N, D)
    out = jnp.transpose(out, (1, 0, 2)).reshape(N, H * D) + bias
    return jnp.where(out > 0, out, jnp.exp(out) - 1.0)


def build_dense_adjacency(edge_index, num_nodes):
    """Return (adj01 f32, additive bf16 mask). adj[i, j] = 1 iff edge j -> i,
    self-loops added (matches PyG add_self_loops=True)."""
    src, dst = edge_index[0], edge_index[1]
    adj = jnp.zeros((num_nodes, num_nodes), jnp.float32)
    adj = adj.at[dst, src].set(1.0)
    adj = jnp.maximum(adj, jnp.eye(num_nodes, dtype=jnp.float32))
    add_mask = jnp.where(adj > 0, 0.0, -1e30).astype(jnp.bfloat16)
    return adj, add_mask


if __name__ == "__main__":
    # Small synthetic problem consistent with GATWrapper(in_dim=8, out_dim=8, heads=2).
    N, F_IN, D_OUT, HEADS = 16, 8, 8, 2

    key = jax.random.PRNGKey(0)
    kx, kw, ks, kd, kb = jax.random.split(key, 5)

    # Node features.
    x = jax.random.normal(kx, (N, F_IN), jnp.float32)

    # Deterministic edge_index (2, E): a ring (both directions) + a few chords.
    ring_src = jnp.arange(N)
    ring_dst = (jnp.arange(N) + 1) % N
    chord_src = jnp.array([0, 3, 5, 7, 10, 12], jnp.int32)
    chord_dst = jnp.array([8, 11, 1, 14, 2, 6], jnp.int32)
    src = jnp.concatenate([ring_src, ring_dst, chord_src])
    dst = jnp.concatenate([ring_dst, ring_src, chord_dst])
    edge_index = jnp.stack([src, dst]).astype(jnp.int32)       # (2, E)

    adj01, add_mask = build_dense_adjacency(edge_index, N)

    # Deterministic parameter init (shapes follow PyG GATConv(in_dim, out_dim, heads)).
    W = 0.3 * jax.random.normal(kw, (HEADS, F_IN, D_OUT), jnp.float32)
    att_src = 0.3 * jax.random.normal(ks, (HEADS, 1, D_OUT), jnp.float32)
    att_dst = 0.3 * jax.random.normal(kd, (HEADS, 1, D_OUT), jnp.float32)
    bias = 0.1 * jax.random.normal(kb, (HEADS * D_OUT,), jnp.float32)

    out = gat_forward(x, add_mask, W, att_src, att_dst, bias)
    out = jax.block_until_ready(out)

    ref = gat_reference(x, adj01, W, att_src, att_dst, bias)
    assert out.shape == (N, HEADS * D_OUT), out.shape
    # Tolerance loosened vs pure-f32 reference: kernel uses bf16 MXU operands and
    # approx reciprocal (per perf review); accumulation stays f32.
    assert jnp.allclose(out, ref, atol=5e-2, rtol=5e-2), float(jnp.max(jnp.abs(out - ref)))

    print("KERNEL_OK")
</pallas_src>

<mosaic_0001>
module attributes {stable_mosaic.version = 11 : i64} {
  func.func @_gat_kernel(%arg0: i32, %arg1: memref<16x8xf32, #tpu.memory_space<vmem>>, %arg2: memref<16x8xf32, #tpu.memory_space<vmem>>, %arg3: memref<8x16xf32, #tpu.memory_space<vmem>>, %arg4: memref<8x2xf32, #tpu.memory_space<vmem>>, %arg5: memref<8x2xf32, #tpu.memory_space<vmem>>, %arg6: memref<16x16xbf16, #tpu.memory_space<vmem>>, %arg7: memref<1x16xf32, #tpu.memory_space<vmem>>, %arg8: memref<16x16xf32, #tpu.memory_space<vmem>>) attributes {dimension_semantics = [#tpu.dimension_semantics<parallel>], iteration_bounds = array<i64: 1>, scalar_prefetch = 0 : i64, scratch_operands = 0 : i64, tpu.core_type = #tpu.core_type<tc>, window_params = [{pipeline_mode = #tpu.pipeline_mode<synchronous>, transform_indices = @transform_0, window_bounds = array<i64: 16, 8>}, {transform_indices = @transform_1, window_bounds = array<i64: 16, 8>}, {pipeline_mode = #tpu.pipeline_mode<synchronous>, transform_indices = @transform_2, window_bounds = array<i64: 8, 16>}, {pipeline_mode = #tpu.pipeline_mode<synchronous>, transform_indices = @transform_3, window_bounds = array<i64: 8, 2>}, {pipeline_mode = #tpu.pipeline_mode<synchronous>, transform_indices = @transform_4, window_bounds = array<i64: 8, 2>}, {transform_indices = @transform_5, window_bounds = array<i64: 16, 16>}, {pipeline_mode = #tpu.pipeline_mode<synchronous>, transform_indices = @transform_6, window_bounds = array<i64: 1, 16>}, {transform_indices = @transform_7, window_bounds = array<i64: 16, 16>}]} {
    %c0 = arith.constant 0 : index
    %c0_0 = arith.constant 0 : index
    %0 = vector.load %arg1[%c0, %c0_0] : memref<16x8xf32, #tpu.memory_space<vmem>>, vector<16x8xf32>
    %c0_1 = arith.constant 0 : index
    %c0_2 = arith.constant 0 : index
    %1 = vector.load %arg2[%c0_1, %c0_2] : memref<16x8xf32, #tpu.memory_space<vmem>>, vector<16x8xf32>
    %2 = arith.truncf %0 : vector<16x8xf32> to vector<16x8xbf16>
    %c0_3 = arith.constant 0 : index
    %c0_4 = arith.constant 0 : index
    %3 = vector.load %arg3[%c0_3, %c0_4] : memref<8x16xf32, #tpu.memory_space<vmem>>, vector<8x16xf32>
    %4 = arith.truncf %3 : vector<8x16xf32> to vector<8x16xbf16>
    %cst = arith.constant dense<0.000000e+00> : vector<16x16xf32>
    %5 = tpu.matmul %2, %4, %cst {dimension_numbers = #tpu.dot_dimension_numbers<[1], [0], [0], [1], [0, 0, 1, 1], [], []>} : vector<16x8xbf16>, vector<8x16xbf16>, vector<16x16xf32> -> vector<16x16xf32>
    %6 = arith.truncf %5 : vector<16x16xf32> to vector<16x16xbf16>
    %c0_5 = arith.constant 0 : index
    %c0_6 = arith.constant 0 : index
    %7 = vector.load %arg4[%c0_5, %c0_6] : memref<8x2xf32, #tpu.memory_space<vmem>>, vector<8x2xf32>
    %cst_7 = arith.constant dense<0.000000e+00> : vector<16x2xf32>
    %8 = tpu.matmul %0, %7, %cst_7 {dimension_numbers = #tpu.dot_dimension_numbers<[1], [0], [0], [1], [0, 0, 1, 1], [], []>} : vector<16x8xf32>, vector<8x2xf32>, vector<16x2xf32> -> vector<16x2xf32>
    %c0_8 = arith.constant 0 : index
    %c0_9 = arith.constant 0 : index
    %9 = vector.load %arg5[%c0_8, %c0_9] : memref<8x2xf32, #tpu.memory_space<vmem>>, vector<8x2xf32>
    %cst_10 = arith.constant dense<0.000000e+00> : vector<16x2xf32>
    %10 = tpu.matmul %1, %9, %cst_10 {dimension_numbers = #tpu.dot_dimension_numbers<[1], [0], [0], [1], [0, 0, 1, 1], [], []>} : vector<16x8xf32>, vector<8x2xf32>, vector<16x2xf32> -> vector<16x2xf32>
    %11 = tpu.transpose %8, [1, 0] : vector<16x2xf32> -> vector<2x16xf32>
    %c0_11 = arith.constant 0 : index
    %c0_12 = arith.constant 0 : index
    %12 = vector.load %arg6[%c0_11, %c0_12] : memref<16x16xbf16, #tpu.memory_space<vmem>>, vector<16x16xbf16>
    %13 = arith.extf %12 : vector<16x16xbf16> to vector<16x16xf32>
    %14 = vector.extract_strided_slice %10 {offsets = [0, 0], sizes = [16, 1], strides = [1, 1]} : vector<16x2xf32> to vector<16x1xf32>
    %15 = vector.extract_strided_slice %11 {offsets = [0, 0], sizes = [1, 16], strides = [1, 1]} : vector<2x16xf32> to vector<1x16xf32>
    %16 = vector.broadcast %14 : vector<16x1xf32> to vector<16x16xf32>
    %17 = vector.broadcast %15 : vector<1x16xf32> to vector<16x16xf32>
    %18 = arith.addf %16, %17 : vector<16x16xf32>
    %cst_13 = arith.constant 0.000000e+00 : f32
    %19 = vector.broadcast %cst_13 : f32 to vector<16x16xf32>
    %20 = arith.cmpf ogt, %18, %19 : vector<16x16xf32>
    %cst_14 = arith.constant 2.000000e-01 : f32
    %21 = vector.broadcast %cst_14 : f32 to vector<16x16xf32>
    %22 = arith.mulf %21, %18 : vector<16x16xf32>
    %23 = arith.select %20, %18, %22 : vector<16x16xi1>, vector<16x16xf32>
    %24 = arith.addf %23, %13 : vector<16x16xf32>
    %cst_15 = arith.constant dense<0xFF800000> : vector<16xf32>
    %25 = vector.multi_reduction <maximumf>, %24, %cst_15 [1] : vector<16x16xf32> to vector<16xf32>
    %26 = vector.shape_cast %25 : vector<16xf32> to vector<16x1xf32>
    %27 = vector.broadcast %26 : vector<16x1xf32> to vector<16x16xf32>
    %28 = arith.subf %24, %27 : vector<16x16xf32>
    %29 = math.exp %28 : vector<16x16xf32>
    %cst_16 = arith.constant dense<0.000000e+00> : vector<16xf32>
    %30 = vector.multi_reduction <add>, %29, %cst_16 [1] : vector<16x16xf32> to vector<16xf32>
    %31 = vector.shape_cast %30 : vector<16xf32> to vector<16x1xf32>
    %32 = tpu.reciprocal %31 {approx = true} : vector<16x1xf32> -> vector<16x1xf32>
    %33 = vector.broadcast %32 : vector<16x1xf32> to vector<16x16xf32>
    %34 = arith.mulf %29, %33 : vector<16x16xf32>
    %35 = arith.truncf %34 : vector<16x16xf32> to vector<16x16xbf16>
    %36 = vector.extract_strided_slice %6 {offsets = [0, 0], sizes = [16, 8], strides = [1, 1]} : vector<16x16xbf16> to vector<16x8xbf16>
    %cst_17 = arith.constant dense<0.000000e+00> : vector<16x8xf32>
    %37 = tpu.matmul %35, %36, %cst_17 {dimension_numbers = #tpu.dot_dimension_numbers<[1], [0], [0], [1], [0, 0, 1, 1], [], []>} : vector<16x16xbf16>, vector<16x8xbf16>, vector<16x8xf32> -> vector<16x8xf32>
    %38 = vector.extract_strided_slice %10 {offsets = [0, 1], sizes = [16, 1], strides = [1, 1]} : vector<16x2xf32> to vector<16x1xf32>
    %39 = vector.extract_strided_slice %11 {offsets = [1, 0], sizes = [1, 16], strides = [1, 1]} : vector<2x16xf32> to vector<1x16xf32>
    %40 = vector.broadcast %38 : vector<16x1xf32> to vector<16x16xf32>
    %41 = vector.broadcast %39 : vector<1x16xf32> to vector<16x16xf32>
    %42 = arith.addf %40, %41 : vector<16x16xf32>
    %cst_18 = arith.constant 0.000000e+00 : f32
    %43 = vector.broadcast %cst_18 : f32 to vector<16x16xf32>
    %44 = arith.cmpf ogt, %42, %43 : vector<16x16xf32>
    %cst_19 = arith.constant 2.000000e-01 : f32
    %45 = vector.broadcast %cst_19 : f32 to vector<16x16xf32>
    %46 = arith.mulf %45, %42 : vector<16x16xf32>
    %47 = arith.select %44, %42, %46 : vector<16x16xi1>, vector<16x16xf32>
    %48 = arith.addf %47, %13 : vector<16x16xf32>
    %cst_20 = arith.constant dense<0xFF800000> : vector<16xf32>
    %49 = vector.multi_reduction <maximumf>, %48, %cst_20 [1] : vector<16x16xf32> to vector<16xf32>
    %50 = vector.shape_cast %49 : vector<16xf32> to vector<16x1xf32>
    %51 = vector.broadcast %50 : vector<16x1xf32> to vector<16x16xf32>
    %52 = arith.subf %48, %51 : vector<16x16xf32>
    %53 = math.exp %52 : vector<16x16xf32>
    %cst_21 = arith.constant dense<0.000000e+00> : vector<16xf32>
    %54 = vector.multi_reduction <add>, %53, %cst_21 [1] : vector<16x16xf32> to vector<16xf32>
    %55 = vector.shape_cast %54 : vector<16xf32> to vector<16x1xf32>
    %56 = tpu.reciprocal %55 {approx = true} : vector<16x1xf32> -> vector<16x1xf32>
    %57 = vector.broadcast %56 : vector<16x1xf32> to vector<16x16xf32>
    %58 = arith.mulf %53, %57 : vector<16x16xf32>
    %59 = arith.truncf %58 : vector<16x16xf32> to vector<16x16xbf16>
    %60 = vector.extract_strided_slice %6 {offsets = [0, 8], sizes = [16, 8], strides = [1, 1]} : vector<16x16xbf16> to vector<16x8xbf16>
    %cst_22 = arith.constant dense<0.000000e+00> : vector<16x8xf32>
    %61 = tpu.matmul %59, %60, %cst_22 {dimension_numbers = #tpu.dot_dimension_numbers<[1], [0], [0], [1], [0, 0, 1, 1], [], []>} : vector<16x16xbf16>, vector<16x8xbf16>, vector<16x8xf32> -> vector<16x8xf32>
    %62 = tpu.concatenate %37, %61 in 1 : vector<16x8xf32>, vector<16x8xf32> -> vector<16x16xf32>
    %c0_23 = arith.constant 0 : index
    %c0_24 = arith.constant 0 : index
    %63 = vector.load %arg7[%c0_23, %c0_24] : memref<1x16xf32, #tpu.memory_space<vmem>>, vector<1x16xf32>
    %64 = vector.broadcast %63 : vector<1x16xf32> to vector<16x16xf32>
    %65 = arith.addf %62, %64 : vector<16x16xf32>
    %cst_25 = arith.constant 0.000000e+00 : f32
    %66 = vector.broadcast %cst_25 : f32 to vector<16x16xf32>
    %67 = arith.cmpf ogt, %65, %66 : vector<16x16xf32>
    %68 = math.exp %65 : vector<16x16xf32>
    %cst_26 = arith.constant 1.000000e+00 : f32
    %69 = vector.broadcast %cst_26 : f32 to vector<16x16xf32>
    %70 = arith.subf %68, %69 : vector<16x16xf32>
    %71 = arith.select %67, %65, %70 : vector<16x16xi1>, vector<16x16xf32>
    %c0_27 = arith.constant 0 : index
    %c0_28 = arith.constant 0 : index
    %72 = vector.load %arg8[%c0_27, %c0_28] : memref<16x16xf32, #tpu.memory_space<vmem>>, vector<16x16xf32>
    tpu.vector_store %arg8[%c0_27, %c0_28], %71 {strides = array<i32>} : memref<16x16xf32, #tpu.memory_space<vmem>>, vector<16x16xf32>,
    return
  }
  func.func @transform_0(%arg0: i32) -> (i32, i32) {
    %c0_i32 = arith.constant 0 : i32
    %c0_i32_0 = arith.constant 0 : i32
    %c0_i32_1 = arith.constant 0 : i32
    return %c0_i32, %c0_i32_0 : i32, i32
  }
  func.func @transform_1(%arg0: i32) -> (i32, i32) {
    %c0_i32 = arith.constant 0 : i32
    %c0_i32_0 = arith.constant 0 : i32
    return %arg0, %c0_i32 : i32, i32
  }
  func.func @transform_2(%arg0: i32) -> (i32, i32) {
    %c0_i32 = arith.constant 0 : i32
    %c0_i32_0 = arith.constant 0 : i32
    %c0_i32_1 = arith.constant 0 : i32
    return %c0_i32, %c0_i32_0 : i32, i32
  }
  func.func @transform_3(%arg0: i32) -> (i32, i32) {
    %c0_i32 = arith.constant 0 : i32
    %c0_i32_0 = arith.constant 0 : i32
    %c0_i32_1 = arith.constant 0 : i32
    return %c0_i32, %c0_i32_0 : i32, i32
  }
  func.func @transform_4(%arg0: i32) -> (i32, i32) {
    %c0_i32 = arith.constant 0 : i32
    %c0_i32_0 = arith.constant 0 : i32
    %c0_i32_1 = arith.constant 0 : i32
    return %c0_i32, %c0_i32_0 : i32, i32
  }
  func.func @transform_5(%arg0: i32) -> (i32, i32) {
    %c0_i32 = arith.constant 0 : i32
    %c0_i32_0 = arith.constant 0 : i32
    return %arg0, %c0_i32 : i32, i32
  }
  func.func @transform_6(%arg0: i32) -> (i32, i32) {
    %c0_i32 = arith.constant 0 : i32
    %c0_i32_0 = arith.constant 0 : i32
    %c0_i32_1 = arith.constant 0 : i32
    return %c0_i32, %c0_i32_0 : i32, i32
  }
  func.func @transform_7(%arg0: i32) -> (i32, i32) {
    %c0_i32 = arith.constant 0 : i32
    %c0_i32_0 = arith.constant 0 : i32
    return %arg0, %c0_i32 : i32, i32
  }
}

</mosaic_0001>

<bundles_post_ra>
// kernel: gat_forward.1
= control target key start
LH: loop header
LB: loop body
LE: loop exit
PB: predicated region body
PF: predicated region fallthrough
CT: control target
= control target key end

     0   :  { %vm35_vm0 = vcmask 64512   ;;  %s499_s0 = inlined_call_operand.vmem [shape: f32[16,8], index: 0, kind: input, shape index: {}, may-alias: {0,1}]   ;;  %s500_s1 = inlined_call_operand.vmem [shape: f32[16,8], index: 1, kind: input, shape index: {}, may-alias: {0,1}]   ;;  %s501_s2 = inlined_call_operand.vmem [shape: f32[8,16], index: 2, kind: input, shape index: {}]   ;;  %s502_s3 = inlined_call_operand.vmem [shape: f32[8,2], index: 3, kind: input, shape index: {}]   ;;  %s503_s4 = inlined_call_operand.vmem [shape: f32[8,2], index: 4, kind: input, shape index: {}]   ;;  %s504_s5 = inlined_call_operand.vmem [shape: bf16[16,16], index: 5, kind: input, shape index: {}]   ;;  %s505_s6 = inlined_call_operand.vmem [shape: f32[1,16], index: 6, kind: input, shape index: {}]   ;;  %s506_s7 = inlined_call_operand.hbm [shape: f32[16,16], index: 7, kind: output, shape index: {}]  }
   0x1   :  { %v59_v0 = vld [vmem:[%s502_s3] sm:$0xff]  ;;  %v29_v2 = vld [vmem:[%s499_s0 + $0x8] sm:$0xff] }
   0x2   :  { %v28_v1 = vld [vmem:[%s499_s0] sm:$0xff]  ;;  %81 = vmatpush.msra.mxu1 %v59_v0  ;;  %344 = vmatpush.msra.mxu2 %v59_v0 }
   0x3   :  { %v32_v3 = vpack.c.bf16 %v29_v2, %v28_v1  ;;  %v89_v4 = vld [vmem:[%s503_s4] sm:$0xff]  ;;  %332 = vmatmul.msk.f32.vlgmr.msra.gmra.mxu1 %vm35_vm0, %v28_v1  ;;  %333 = vmatmul.msk.f32.vlgmr.msra.gmra.mxu2 %vm35_vm0, %v29_v2 }
   0x4   :  { %12 = vsyncpa [#allocation3], 0  ;;  %111 = vmatpush.msrb.mxu2 %v89_v4  ;;  %v30_v5 = vld [vmem:[%s500_s1] sm:$0xff]  ;;  %v31_v6 = vld [vmem:[%s500_s1 + $0x8] sm:$0xff]  ;;  %v401_v7 = vmov 1   ;;  %v402_v8 = vmov 0  }
   0x5   :  { %352 = vset.pattern.permute.xlu0 %v401_v7  ;;  %353 = vset.pattern.permute.xlu2 %v402_v8  ;;  %v33_v13 = vld [vmem:[%s501_s2] sm:$0xff]  ;;  %vm39_vm1 = vcmask 1043456   ;;  %vm176_vm5 = vcmask 130048   ;;  %s403_s2 = smov 120   ;;  %s319_s18 = sshll.u32 %s506_s7, 4  ;;  %s320_s18 = int_to_ptr.hbm [resolvable:$true] %s319_s18 }
   0x6   :  { %v34_v14 = vpack.c.bf16 %v33_v13, %v33_v13  ;;  %v341_v22 = vld [vmem:[%s504_s5] sm:$0xff]   ;;  %s404_s5 = smov 8   ;;  %s406_s19 = smov 128  }
   0x7   :  { %v343_v28 = vunpack.c.h.bf16 %v341_v22  ;;  %v342_v29 = vunpack.c.l.bf16 %v341_v22 }
   0x8   :  { %v41_v15 = vsel %vm39_vm1, %v34_v14, 0 }
   0x9   :  { %50 = vmatpush.bf16.msra.mxu0 %v41_v15 }
   0xb   :  { %334 = vmatmul.msk.f32.vlgmr.msrb.gmra.mxu2 %vm35_vm0, %v30_v5 }
   0xc   :  { %331 = vmatmul.msk.bf16.vlgmr.msra.gmra.mxu0 %vm35_vm0, %v32_v3 }
  0x13   :  { %335 = vmatmul.msk.f32.gmra.mxu2 %vm35_vm0, %v31_v6 }
  0x80   :  { %v83_v9 = vpop.f32.mrf.mxu1 }
  0x81   :  { %119 = vxpose.xlu1.b32.start [1/2] (short) (narrow) %v83_v9, 8 }
  0x86   :  { %v86_v10 = vpop.f32.mrf.mxu2 }
  0x89   :  { %120 = vxpose.xlu1.b32.end [2/2] (short) (narrow) %v86_v10, 8  ;;  %v52_v46 = vpop.f32.mrf.mxu0 }
  0x8a   :  { %v57_v47 = vpack.c.bf16 %v52_v46, %v52_v46 }
  0x8c   :  { %v202_v49 = vunpack.c.l.b16 %v57_v47 }
  0x8e   :  { %v113_v11 = vpop.f32.mrf.mxu2 }
  0x8f   :  { %224 = vperm.xlu0 %352, %v113_v11   ;;  %157 = vperm.xlu2 %353, %v113_v11  }
  0x91   :  { %v54_v48 = vpop.f32.mrf.mxu0 }
  0x92   :  { %v58_v50 = vpack.c.bf16 %v54_v48, %v54_v48 }
  0x94   :  { %v203_v51 = vunpack.c.l.b16 %v58_v50 }
  0x96   :  { %v116_v12 = vpop.f32.mrf.mxu2  ;;  %v204_v52 = vpack.c.b16 %v203_v51, %v202_v49 }
  0x97   :  { %228 = vperm.xlu0 %352, %v116_v12   ;;  %162 = vperm.xlu2 %353, %v116_v12  }
  0x98   :  { %216 = vmatpush.bf16.msra.mxu3 %v204_v52 }
  0xe9   :  { %v158_v17 = vpop.permute.xlu2 %157 }
  0xf1   :  { %v163_v23 = vpop.permute.xlu2 %162 }
 0x101   :  { %v225_v16 = vpop.permute.xlu0 %224 }
 0x109   :  { %v229_v19 = vpop.permute.xlu0 %228 }
 0x125   :  { %v135_v18 = vpop.trf.xlu1 }
 0x126   :  { %v165_v20 = vperm.slane %v135_v18, 0  ;;  %v231_v21 = vperm.slane %v135_v18, 1 }
 0x128   :  { %v166_v24 = vadd.f32 %v165_v20, %v158_v17  ;;  %v232_v25 = vadd.f32 %v231_v21, %v225_v16  ;;  %v233_v26 = vadd.f32 %v231_v21, %v229_v19  ;;  %v167_v27 = vadd.f32 %v165_v20, %v163_v23 }
 0x12a   :  { %vm235_vm2 = vcmp.gt.f32.partialorder %v233_v26, 0.0  ;;  %v237_v30 = vmul.f32 0.2, %v233_v26  ;;  %vm234_vm3 = vcmp.gt.f32.partialorder %v232_v25, 0.0  ;;  %v236_v31 = vmul.f32 0.2, %v232_v25 }
 0x12b   :  { %vm168_vm4 = vcmp.gt.f32.partialorder %v166_v24, 0.0  ;;  %v170_v32 = vmul.f32 0.2, %v166_v24  ;;  %v171_v38 = vmul.f32 0.2, %v167_v27  ;;  %vm169_vm6 = vcmp.gt.f32.partialorder %v167_v27, 0.0 }
 0x12c   :  { %v239_v33 = vsel %vm235_vm2, %v233_v26, %v237_v30  ;;  %v238_v34 = vsel %vm234_vm3, %v232_v25, %v236_v31 }
 0x12d   :  { %v241_v35 = vadd.f32 %v343_v28, %v239_v33  ;;  %v240_v36 = vadd.f32 %v342_v29, %v238_v34  ;;  %v172_v37 = vsel %vm168_vm4, %v166_v24, %v170_v32  ;;  %v173_v43 = vsel %vm169_vm6, %v167_v27, %v171_v38  ;;  %v354_v27 = vld [vmem:[%s505_s6] ss:$0 sm:$0xff]  ;;  %s405_s6 = smov [#allocation2]  }
 0x12e   :  { %v174_v39 = vadd.f32 %v342_v29, %v172_v37  ;;  %v175_v44 = vadd.f32 %v343_v28, %v173_v43  ;;  %s317_s15 = sshll.u32 %s405_s6, 4  ;;  %s318_s15 = int_to_ptr.vmem [resolvable:$true] %s317_s15 }
 0x12f   :  { %v245_v40 = vsel %vm176_vm5, %v241_v35, -inf  ;;  %v242_v41 = vsel %vm176_vm5, %v240_v36, -inf }
 0x130   :  { %246 = vmax.xlane.f32.xlu1 %v245_v40  ;;  %243 = vmax.xlane.f32.xlu0 %v242_v41  ;;  %v177_v42 = vsel %vm176_vm5, %v174_v39, -inf  ;;  %v180_v45 = vsel %vm176_vm5, %v175_v44, -inf }
 0x131   :  { %178 = vmax.xlane.f32.xlu2 %v177_v42 }
 0x139   :  { %181 = vmax.xlane.f32.xlu2 %v180_v45 }
 0x1a3   :  { %v247_v53 = vpop.xlane.xlu1 %246  ;;  %v244_v54 = vpop.xlane.xlu0 %243 }
 0x1a4   :  { %v249_v55 = vsub.f32 %v241_v35, %v247_v53  ;;  %v248_v56 = vsub.f32 %v240_v36, %v244_v54  ;;  %v179_v57 = vpop.xlane.xlu2 %178 }
 0x1a5   :  { %v183_v60 = vsub.f32 %v174_v39, %v179_v57 }
 0x1a6   :  { %v252_v58 = vmul.f32 1.442695, %v249_v55  ;;  %v250_v59 = vmul.f32 1.442695, %v248_v56 }
 0x1a7   :  { %v185_v61 = vmul.f32 1.442695, %v183_v60 }
 0x1a8   :  { %355 = vpow2.f32 %v252_v58 }
 0x1a9   :  { %357 = vpow2.f32 %v250_v59 }
 0x1aa   :  { %359 = vpow2.f32 %v185_v61 }
 0x1ac   :  { %v182_v62 = vpop.xlane.xlu2 %181 }
 0x1ad   :  { %v184_v0 = vsub.f32 %v175_v44, %v182_v62 }
 0x1ae   :  { %v356_v63 = vpop.eup %355 }
 0x1af   :  { %v358_v1 = vpop.eup %357  ;;  %v257_v2 = vsel %vm176_vm5, %v356_v63, 0.0  ;;  %v187_v4 = vmul.f32 1.442695, %v184_v0 }
 0x1b0   :  { %v254_v3 = vsel %vm176_vm5, %v358_v1, 0.0  ;;  %258 = vadd.xlane.f32.xlu2 %v257_v2  ;;  %v360_v5 = vpop.eup %359 }
 0x1b1   :  { %255 = vadd.xlane.f32.xlu0 %v254_v3  ;;  %361 = vpow2.f32 %v187_v4  ;;  %v189_v6 = vsel %vm176_vm5, %v360_v5, 0.0 }
 0x1b7   :  { %v362_v7 = vpop.eup %361 }
 0x1b8   :  { %190 = vadd.xlane.f32.xlu2 %v189_v6  ;;  %v192_v8 = vsel %vm176_vm5, %v362_v7, 0.0 }
 0x1c0   :  { %193 = vadd.xlane.f32.xlu2 %v192_v8 }
 0x1c5   :  { %265 = vrot.lane.b32.xlu0 %v204_v52, %s403_s2 }
 0x223   :  { %v259_v9 = vpop.xlane.xlu2 %258 }
 0x224   :  { %v256_v10 = vpop.xlane.xlu0 %255  ;;  %363 = vrcp.f32 %v259_v9 }
 0x225   :  { %365 = vrcp.f32 %v256_v10 }
 0x22a   :  { %v364_v12 = vpop.eup %363 }
 0x22b   :  { %v191_v11 = vpop.xlane.xlu2 %190  ;;  %v366_v13 = vpop.eup %365  ;;  %v263_v16 = vmul.f32 %v364_v12, %v356_v63 }
 0x22c   :  { %367 = vrcp.f32 %v191_v11  ;;  %v262_v15 = vmul.f32 %v366_v13, %v358_v1 }
 0x22e   :  { %v264_v19 = vpack.c.bf16 %v263_v16, %v262_v15 }
 0x232   :  { %v368_v18 = vpop.eup %367 }
 0x233   :  { %v194_v14 = vpop.xlane.xlu2 %193  ;;  %v197_v21 = vmul.f32 %v368_v18, %v360_v5 }
 0x234   :  { %369 = vrcp.f32 %v194_v14 }
 0x237   :  { %v266_v17 = vpop.permute.xlu0 %265 }
 0x238   :  { %278 = vmatpush.bf16.msrb.mxu1 %v266_v17 }
 0x23a   :  { %v370_v20 = vpop.eup %369 }
 0x23b   :  { %337 = vmatmul.msk.bf16.vlgmr.msrb.gmra.mxu1 %vm176_vm5, %v264_v19  ;;  %v198_v22 = vmul.f32 %v370_v20, %v362_v7 }
 0x23d   :  { %v199_v23 = vpack.c.bf16 %v198_v22, %v197_v21 }
 0x23f   :  { %336 = vmatmul.msk.bf16.vlgmr.msra.gmra.mxu3 %vm176_vm5, %v199_v23 }
 0x2b8   :  { %v280_v24 = vpop.f32.mrf.mxu1 }
 0x2b9   :  { %287 = vrot.lane.b32.xlu0 %v280_v24, %s404_s5 }
 0x2c0   :  { %v282_v25 = vpop.f32.mrf.mxu1 }
 0x2c1   :  { %289 = vrot.lane.b32.xlu2 %v282_v25, %s404_s5 }
 0x2c2   :  { %v218_v26 = vpop.f32.mrf.mxu3 }
 0x2ca   :  { %v220_v28 = vpop.f32.mrf.mxu3 }
 0x31b   :  { %v290_v29 = vpop.permute.xlu2 %289 }
 0x31c   :  { %v294_v30 = vsel %vm35_vm0, %v220_v28, %v290_v29 }
 0x31d   :  { %v300_v31 = vadd.f32 %v354_v27, %v294_v30 }
 0x31f   :  { %v305_v32 = vmul.f32 1.442695, %v300_v31  ;;  %vm302_vm7 = vcmp.gt.f32.partialorder %v300_v31, 0.0 }
 0x321   :  { %371 = vpow2.f32 %v305_v32 }
 0x327   :  { %v372_v33 = vpop.eup %371 }
 0x328   :  { %v339_v34 = vadd.f32 -1.0, %v372_v33 }
 0x32a   :  { %v310_v35 = vsel %vm302_vm7, %v300_v31, %v339_v34 }
 0x32b   :  { %312 = vst.msk [vmem:[#allocation2 + $0x8] sm:$0xff] %vm176_vm5, %v310_v35  ;;  %v288_v36 = vpop.permute.xlu0 %287 }
 0x32c   :  { %v293_v37 = vsel %vm35_vm0, %v218_v26, %v288_v36 }
 0x32d   :  { %v299_v38 = vadd.f32 %v354_v27, %v293_v37 }
 0x32f   :  { %v303_v39 = vmul.f32 1.442695, %v299_v38  ;;  %vm301_vm8 = vcmp.gt.f32.partialorder %v299_v38, 0.0 }
 0x331   :  { %373 = vpow2.f32 %v303_v39 }
 0x337   :  { %v374_v40 = vpop.eup %373 }
 0x338   :  { %v338_v41 = vadd.f32 -1.0, %v374_v40 }
 0x33a   :  { %v309_v42 = vsel %vm301_vm8, %v299_v38, %v338_v41 }
 0x33b   :  { %311 = vst.msk [vmem:[#allocation2] sm:$0xff] %vm176_vm5, %v309_v42 }
 0x33c   :  { %325 = dma.vmem_to_hbm [thread:$0]  %s318_s15, 256, %s320_s18, [#allocation3], %s406_s19, %s406_s19, %s404_s5  }
 0x33d   :  { %399 = dma.done.wait [#allocation3], 256  }
 0x33e   :  { %400 = vsyncadd [#allocation3], 4294967040 }
 0x33f   :  { %330 = vsyncpa [#allocation3], 1 }

</bundles_post_ra>
